<compile_context>
chip_gen: v7x
topology: tpu7x:2x2x1
jax: 0.10.0
libtpu: 0.0.40
codegen_flags: <defaults>
</compile_context>

<pallas_src>
import functools

import jax
import jax.numpy as jnp
import numpy as np
from jax import lax
from jax.experimental import pallas as pl
from jax.experimental.pallas import tpu as pltpu


def _round_up(x, m):
    return (x + m - 1) // m * m


def _conv_kernel(x_ref, halo_ref, w_ref, b_ref, o_ref, xs_ref, *,
                 num_taps, cp, ltile):
    """One (batch, lane-tile) grid point.

    x_ref:    (1, Cp, Ltile)     current lane tile of the (folded) input
    halo_ref: (1, Cp, Hpad)      first Hpad lanes of the NEXT lane tile
    w_ref:    (Coutp, Q*Cp)      K-folded weight (resident across the grid)
    b_ref:    (Coutp, 1)         bias
    o_ref:    (1, Coutp, Ltile)  output tile (valid lanes trimmed by wrapper)
    xs_ref:   (Q*Cp, Ltile)      VMEM scratch: K-folded activation
    """
    x = x_ref[0]                                      # (Cp, Ltile)
    xs_ref[pl.ds(0, cp), :] = x
    if num_taps > 1:
        halo = halo_ref[0]                            # (Cp, Hpad)
        for q in range(1, num_taps):
            # Tap q needs x[:, p + q]; pltpu.roll(x, Ltile - q) gives that for
            # p < Ltile - q (XLU slot, overlaps the MXU work).  The wrapped
            # tail lanes are then overwritten with the next tile's halo.
            xs_ref[pl.ds(q * cp, cp), :] = pltpu.roll(x, shift=ltile - q, axis=1)
            xs_ref[pl.ds(q * cp, cp), pl.ds(ltile - q, q)] = halo[:, :q]
    acc = jnp.dot(w_ref[...], xs_ref[...], preferred_element_type=jnp.float32)
    o_ref[0] = (acc + b_ref[...]).astype(o_ref.dtype)


def my_conv1d_pad_same(x, weight, bias, *, stride, groups=1,
                       compute_dtype=jnp.float32, lane_tile=1024,
                       vmem_budget_bytes=40 << 20):
    """SAME-padded Conv1d.  x: (N, Cin, L); weight: (Cout, Cin//groups, K)
    (PyTorch layout); bias: (Cout,).  Returns (N, Cout, Lout).

    compute_dtype=jnp.bfloat16 halves HBM traffic and uses the bf16 MXU path
    (f32 accumulation), at ~1e-2 level numerical difference vs. f32.
    """
    N, Cin, L = x.shape
    Cout, Cin_g, K = weight.shape
    assert Cin_g * groups == Cin and Cout % groups == 0

    # ---- SAME padding, exactly as the PyTorch module computes it ------------
    out_dim = (L + stride - 1) // stride
    p = max(0, (out_dim - 1) * stride + K - L)
    pad_left = p // 2
    pad_right = p - pad_left
    Lp = L + p
    Lout = (Lp - K) // stride + 1

    # ---- densify grouped weight to (Cout, Cin, K) block-diagonal ------------
    if groups == 1:
        w_dense = weight
    else:
        opg = Cout // groups
        w_dense = jnp.zeros((Cout, Cin, K), weight.dtype)
        for g in range(groups):
            w_dense = w_dense.at[g * opg:(g + 1) * opg,
                                 g * Cin_g:(g + 1) * Cin_g, :].set(
                weight[g * opg:(g + 1) * opg])

    # ---- fold the stride into the channel axis (space-to-depth) -------------
    # Reduces to a stride-1 conv with Q = ceil(K/stride) taps, Cin*stride chans.
    Q = -(-K // stride)
    T = -(-Lp // stride)                 # folded sequence length
    Csd = Cin * stride
    Cp = _round_up(Csd, 8)               # sublane-aligned channel count
    Coutp = _round_up(Cout, 8)            # sublane-dense output rows

    # Halo width (look-ahead lanes each tile needs), lane-aligned.
    Hpad = 128 * max(1, -(-(Q - 1) // 128))
    assert Hpad >= Q - 1                  # no-wrap / halo-coverage invariant

    isz = jnp.dtype(compute_dtype).itemsize
    osz = jnp.dtype(x.dtype).itemsize

    def step_bytes(lt):                   # per-grid-step VMEM footprint
        return (2 * Cp * lt * isz               # input tile (double-buffered)
                + 2 * Cp * Hpad * isz           # halo tile
                + 2 * Coutp * Q * Cp * isz      # weight
                + 2 * Coutp * 4                 # bias
                + 2 * Coutp * lt * osz          # output tile
                + Q * Cp * lt * isz             # xs scratch
                + Coutp * lt * 4)               # dot result

    # Lane-tile size: target `lane_tile`, multiple of Hpad (and of 128), no
    # larger than needed, shrunk to fit the (v7x-safe) VMEM budget.
    Ltile = max(Hpad, min(_round_up(lane_tile, Hpad),
                          _round_up(_round_up(T, 128), Hpad)))
    while Ltile > Hpad and step_bytes(Ltile) > vmem_budget_bytes:
        Ltile = max(Hpad, _round_up(Ltile // 2, Hpad))

    nT = -(-T // Ltile)                   # lane tiles per sample
    Lx = nT * Ltile + Hpad                # input length incl. trailing halo pad
    assert nT * Ltile >= T                # all valid folded lanes covered

    # ---- build the kernel input --------------------------------------------
    if stride == 1:
        # Single fused pad: channels -> Cp, lanes -> [pad_left | x | zeros].
        x_in = jnp.pad(x, ((0, 0), (0, Cp - Cin),
                           (pad_left, Lx - L - pad_left)))
    else:
        xp = jnp.pad(x, ((0, 0), (0, 0),
                         (pad_left, pad_right + (T * stride - Lp))))
        xsd = xp.reshape(N, Cin, T, stride).transpose(0, 1, 3, 2).reshape(
            N, Csd, T)
        x_in = jnp.pad(xsd, ((0, 0), (0, Cp - Csd), (0, Lx - T)))
    x_in = x_in.astype(compute_dtype)

    # ---- K-folded weight: W'[o, q*Cp + c*stride + j] = w[o, c, q*stride + j]
    wq = jnp.zeros((Cout, Cin, stride, Q), w_dense.dtype)
    for k in range(K):
        q, j = divmod(k, stride)
        wq = wq.at[:, :, j, q].set(w_dense[:, :, k])
    w_fold = jnp.zeros((Coutp, Q, Cp), compute_dtype)
    w_fold = w_fold.at[:Cout, :, :Csd].set(
        wq.transpose(0, 3, 1, 2).reshape(Cout, Q, Csd).astype(compute_dtype))
    w_fold = w_fold.reshape(Coutp, Q * Cp)

    b_in = jnp.zeros((Coutp, 1), jnp.float32).at[:Cout, 0].set(
        bias.astype(jnp.float32))

    # ---- pallas_call ---------------------------------------------------------
    halo_blocks = Ltile // Hpad
    kernel = functools.partial(_conv_kernel, num_taps=Q, cp=Cp, ltile=Ltile)
    vmem_limit = int(min(max(step_bytes(Ltile) + (8 << 20), 32 << 20),
                         128 << 20))

    out = pl.pallas_call(
        kernel,
        out_shape=jax.ShapeDtypeStruct((N, Coutp, nT * Ltile), x.dtype),
        grid_spec=pltpu.PrefetchScalarGridSpec(
            num_scalar_prefetch=0,
            grid=(N, nT),
            in_specs=[
                # current lane tile
                pl.BlockSpec((1, Cp, Ltile), lambda n, t: (n, 0, t)),
                # halo: first Hpad lanes of the next lane tile (same array)
                pl.BlockSpec((1, Cp, Hpad),
                             lambda n, t: (n, 0, (t + 1) * halo_blocks)),
                # resident weight / bias
                pl.BlockSpec((Coutp, Q * Cp), lambda n, t: (0, 0)),
                pl.BlockSpec((Coutp, 1), lambda n, t: (0, 0)),
            ],
            out_specs=pl.BlockSpec((1, Coutp, Ltile), lambda n, t: (n, 0, t)),
            scratch_shapes=[pltpu.VMEM((Q * Cp, Ltile), compute_dtype)],
        ),
        compiler_params=pltpu.CompilerParams(
            dimension_semantics=("parallel", "parallel"),
            vmem_limit_bytes=vmem_limit),
    )(x_in, x_in, w_fold, b_in)

    return out[:, :Cout, :Lout]


# ----------------------- pure-JAX reference (for checking) -------------------
def my_conv1d_pad_same_ref(x, weight, bias, *, stride, groups=1):
    L = x.shape[-1]
    K = weight.shape[-1]
    out_dim = (L + stride - 1) // stride
    p = max(0, (out_dim - 1) * stride + K - L)
    pad_left = p // 2
    pad_right = p - pad_left
    y = lax.conv_general_dilated(
        x, weight, window_strides=(stride,), padding=[(pad_left, pad_right)],
        dimension_numbers=("NCH", "OIH", "NCH"), feature_group_count=groups)
    return y + bias[None, :, None]


if __name__ == "__main__":
    key = jax.random.PRNGKey(0)
    kx, kw, kb = jax.random.split(key, 3)

    N, Cin, Cout, K, L = 2, 4, 8, 3, 16
    x = jax.random.normal(kx, (N, Cin, L), jnp.float32)
    bound = 1.0 / np.sqrt(Cin * K)
    w = jax.random.uniform(kw, (Cout, Cin, K), jnp.float32, -bound, bound)
    b = jax.random.uniform(kb, (Cout,), jnp.float32, -bound, bound)

    # stride = 1 config
    out1 = jax.block_until_ready(my_conv1d_pad_same(x, w, b, stride=1))
    ref1 = jax.block_until_ready(my_conv1d_pad_same_ref(x, w, b, stride=1))
    np.testing.assert_allclose(np.asarray(out1), np.asarray(ref1),
                               rtol=1e-4, atol=1e-4)

    # stride = 2 config (exercises the space-to-depth path)
    out2 = jax.block_until_ready(my_conv1d_pad_same(x, w, b, stride=2))
    ref2 = jax.block_until_ready(my_conv1d_pad_same_ref(x, w, b, stride=2))
    np.testing.assert_allclose(np.asarray(out2), np.asarray(ref2),
                               rtol=1e-4, atol=1e-4)

    print("KERNEL_OK")
</pallas_src>

<mosaic_0001>
module attributes {stable_mosaic.version = 11 : i64} {
  func.func @_conv_kernel(%arg0: i32, %arg1: i32, %arg2: memref<1x8x128xf32, #tpu.memory_space<vmem>>, %arg3: memref<1x8x128xf32, #tpu.memory_space<vmem>>, %arg4: memref<8x24xf32, #tpu.memory_space<vmem>>, %arg5: memref<8x1xf32, #tpu.memory_space<vmem>>, %arg6: memref<1x8x128xf32, #tpu.memory_space<vmem>>, %arg7: memref<24x128xf32, #tpu.memory_space<vmem>>) attributes {dimension_semantics = [#tpu.dimension_semantics<parallel>, #tpu.dimension_semantics<parallel>], iteration_bounds = array<i64: 2, 1>, scalar_prefetch = 0 : i64, scratch_operands = 1 : i64, tpu.core_type = #tpu.core_type<tc>, window_params = [{transform_indices = @transform_0, window_bounds = array<i64: 1, 8, 128>}, {transform_indices = @transform_1, window_bounds = array<i64: 1, 8, 128>}, {pipeline_mode = #tpu.pipeline_mode<synchronous>, transform_indices = @transform_2, window_bounds = array<i64: 8, 24>}, {pipeline_mode = #tpu.pipeline_mode<synchronous>, transform_indices = @transform_3, window_bounds = array<i64: 8, 1>}, {transform_indices = @transform_4, window_bounds = array<i64: 1, 8, 128>}]} {
    %c0 = arith.constant 0 : index
    %c0_0 = arith.constant 0 : index
    %c0_1 = arith.constant 0 : index
    %0 = vector.load %arg2[%c0, %c0_0, %c0_1] : memref<1x8x128xf32, #tpu.memory_space<vmem>>, vector<1x8x128xf32>
    %1 = vector.shape_cast %0 : vector<1x8x128xf32> to vector<8x128xf32>
    %c0_2 = arith.constant 0 : index
    %c0_3 = arith.constant 0 : index
    %2 = vector.load %arg7[%c0_2, %c0_3] : memref<24x128xf32, #tpu.memory_space<vmem>>, vector<8x128xf32>
    tpu.vector_store %arg7[%c0_2, %c0_3], %1 {strides = array<i32>} : memref<24x128xf32, #tpu.memory_space<vmem>>, vector<8x128xf32>,
    %c0_4 = arith.constant 0 : index
    %c0_5 = arith.constant 0 : index
    %c0_6 = arith.constant 0 : index
    %3 = vector.load %arg3[%c0_4, %c0_5, %c0_6] : memref<1x8x128xf32, #tpu.memory_space<vmem>>, vector<1x8x128xf32>
    %4 = vector.shape_cast %3 : vector<1x8x128xf32> to vector<8x128xf32>
    %c127_i32 = arith.constant 127 : i32
    %5 = tpu.dynamic_rotate %1 by %c127_i32 dim 1 : vector<8x128xf32>, i32 -> vector<8x128xf32>
    %c8 = arith.constant 8 : index
    %c0_7 = arith.constant 0 : index
    %6 = vector.load %arg7[%c8, %c0_7] : memref<24x128xf32, #tpu.memory_space<vmem>>, vector<8x128xf32>
    tpu.vector_store %arg7[%c8, %c0_7], %5 {strides = array<i32>} : memref<24x128xf32, #tpu.memory_space<vmem>>, vector<8x128xf32>,
    %7 = vector.extract_strided_slice %4 {offsets = [0, 0], sizes = [8, 1], strides = [1, 1]} : vector<8x128xf32> to vector<8x1xf32>
    %c8_8 = arith.constant 8 : index
    %c127 = arith.constant 127 : index
    %8 = vector.load %arg7[%c8_8, %c127] : memref<24x128xf32, #tpu.memory_space<vmem>>, vector<8x1xf32>
    tpu.vector_store %arg7[%c8_8, %c127], %7 {strides = array<i32>} : memref<24x128xf32, #tpu.memory_space<vmem>>, vector<8x1xf32>,
    %c126_i32 = arith.constant 126 : i32
    %9 = tpu.dynamic_rotate %1 by %c126_i32 dim 1 : vector<8x128xf32>, i32 -> vector<8x128xf32>
    %c16 = arith.constant 16 : index
    %c0_9 = arith.constant 0 : index
    %10 = vector.load %arg7[%c16, %c0_9] : memref<24x128xf32, #tpu.memory_space<vmem>>, vector<8x128xf32>
    tpu.vector_store %arg7[%c16, %c0_9], %9 {strides = array<i32>} : memref<24x128xf32, #tpu.memory_space<vmem>>, vector<8x128xf32>,
    %11 = vector.extract_strided_slice %4 {offsets = [0, 0], sizes = [8, 2], strides = [1, 1]} : vector<8x128xf32> to vector<8x2xf32>
    %c16_10 = arith.constant 16 : index
    %c126 = arith.constant 126 : index
    %12 = vector.load %arg7[%c16_10, %c126] : memref<24x128xf32, #tpu.memory_space<vmem>>, vector<8x2xf32>
    tpu.vector_store %arg7[%c16_10, %c126], %11 {strides = array<i32>} : memref<24x128xf32, #tpu.memory_space<vmem>>, vector<8x2xf32>,
    %c0_11 = arith.constant 0 : index
    %c0_12 = arith.constant 0 : index
    %13 = vector.load %arg4[%c0_11, %c0_12] : memref<8x24xf32, #tpu.memory_space<vmem>>, vector<8x24xf32>
    %c0_13 = arith.constant 0 : index
    %c0_14 = arith.constant 0 : index
    %14 = vector.load %arg7[%c0_13, %c0_14] : memref<24x128xf32, #tpu.memory_space<vmem>>, vector<24x128xf32>
    %cst = arith.constant dense<0.000000e+00> : vector<8x128xf32>
    %15 = tpu.matmul %13, %14, %cst {dimension_numbers = #tpu.dot_dimension_numbers<[1], [0], [0], [1], [0, 0, 1, 1], [], []>} : vector<8x24xf32>, vector<24x128xf32>, vector<8x128xf32> -> vector<8x128xf32>
    %c0_15 = arith.constant 0 : index
    %c0_16 = arith.constant 0 : index
    %16 = vector.load %arg5[%c0_15, %c0_16] : memref<8x1xf32, #tpu.memory_space<vmem>>, vector<8x1xf32>
    %17 = vector.broadcast %16 : vector<8x1xf32> to vector<8x128xf32>
    %18 = arith.addf %15, %17 : vector<8x128xf32>
    %c0_17 = arith.constant 0 : index
    %c0_18 = arith.constant 0 : index
    %c0_19 = arith.constant 0 : index
    %19 = vector.load %arg6[%c0_17, %c0_18, %c0_19] : memref<1x8x128xf32, #tpu.memory_space<vmem>>, vector<1x8x128xf32>
    %20 = vector.shape_cast %19 : vector<1x8x128xf32> to vector<8x128xf32>
    %21 = vector.shape_cast %18 : vector<8x128xf32> to vector<1x8x128xf32>
    tpu.vector_store %arg6[%c0_17, %c0_18, %c0_19], %21 {strides = array<i32>} : memref<1x8x128xf32, #tpu.memory_space<vmem>>, vector<1x8x128xf32>,
    return
  }
  func.func @transform_0(%arg0: i32, %arg1: i32) -> (i32, i32, i32) {
    %c0_i32 = arith.constant 0 : i32
    %c0_i32_0 = arith.constant 0 : i32
    return %arg0, %c0_i32, %arg1 : i32, i32, i32
  }
  func.func @transform_1(%arg0: i32, %arg1: i32) -> (i32, i32, i32) {
    %c1_i32 = arith.constant 1 : i32
    %0 = arith.addi %arg1, %c1_i32 : i32
    %c1_i32_0 = arith.constant 1 : i32
    %1 = arith.muli %0, %c1_i32_0 : i32
    %c0_i32 = arith.constant 0 : i32
    %c0_i32_1 = arith.constant 0 : i32
    return %arg0, %c0_i32, %1 : i32, i32, i32
  }
  func.func @transform_2(%arg0: i32, %arg1: i32) -> (i32, i32) {
    %c0_i32 = arith.constant 0 : i32
    %c0_i32_0 = arith.constant 0 : i32
    %c0_i32_1 = arith.constant 0 : i32
    return %c0_i32, %c0_i32_0 : i32, i32
  }
  func.func @transform_3(%arg0: i32, %arg1: i32) -> (i32, i32) {
    %c0_i32 = arith.constant 0 : i32
    %c0_i32_0 = arith.constant 0 : i32
    %c0_i32_1 = arith.constant 0 : i32
    return %c0_i32, %c0_i32_0 : i32, i32
  }
  func.func @transform_4(%arg0: i32, %arg1: i32) -> (i32, i32, i32) {
    %c0_i32 = arith.constant 0 : i32
    %c0_i32_0 = arith.constant 0 : i32
    return %arg0, %c0_i32, %arg1 : i32, i32, i32
  }
}

</mosaic_0001>

<bundles_post_ra>
// kernel: tpu_custom_call.1
= control target key start
LH: loop header
LB: loop body
LE: loop exit
PB: predicated region body
PF: predicated region fallthrough
CT: control target
= control target key end

     0   :  { %9 = vsyncpa [#allocation4], 0  ;;  %s1027_s0 = inlined_call_operand.hbm [shape: f32[2,8,256], index: 0, kind: input, shape index: {}]   ;;  %s1028_s1 = inlined_call_operand.hbm [shape: f32[2,8,256], index: 1, kind: input, shape index: {}]   ;;  %s1029_s2 = inlined_call_operand.vmem [shape: f32[8,24], index: 2, kind: input, shape index: {}]   ;;  %s1030_s3 = inlined_call_operand.vmem [shape: f32[8,1], index: 3, kind: input, shape index: {}]   ;;  %s1031_s4 = inlined_call_operand.hbm [shape: f32[2,8,128], index: 4, kind: output, shape index: {}]  }
   0x1   :  { %11 = vsyncpa [#allocation4 + $0x1], 0 }
   0x2   :  { %12 = vsyncpa [#allocation7], 0 }
   0x3   :  { %14 = vsyncpa [#allocation7 + $0x1], 0 }
   0x4   :  { %15 = vsyncpa [#allocation5], 0 }
   0x5   :  { %17 = vsyncpa [#allocation5 + $0x1], 0  ;;  %s797_s15 = smov 0   ;;  %s799_s16 = smov 0  }
   0x6   :  { %s801_s17 = smov 0   ;;  %s803_s18 = smov 0  }
   0x7   :  { %s805_s19 = smov 0   ;;  %s807_s20 = smov 0  }
   0x8 LB: > { %s503_s21 = sadd.s32 4294967295, %s761_s20   ;;  %s504_s22 = sadd.s32 4294967294, %s761_s20   ;;  %s761_s20 = sphi %s807_s20, %s23_s20   ;;  %s757_s19 = sphi %s805_s19, %s1051_s19   ;;  %s753_s18 = sphi %s803_s18, %s1050_s18   ;;  %s749_s17 = sphi %s801_s17, %s1049_s17   ;;  %s745_s16 = sphi %s799_s16, %s1048_s16   ;;  %s741_s15 = sphi %s797_s15, %s1047_s15  }
   0x9   : > { %s35_s23 = sadd.s32 1, %s757_s19  ;;  %s44_s24 = sadd.s32 1, %s749_s17 }
   0xa   : > { %p37_p0 = scmp.ge.s32.totalorder %s35_s23, 2  ;;  %p51_p1 = scmp.ne.s32.totalorder %s749_s17, %s745_s16 }
   0xb   : > { %p52_p2 = scmp.eq.s32.totalorder %s761_s20, 0  ;;  %p57_p3 = scmp.ne.s32.totalorder %s745_s16, %s741_s15 }
   0xc   : > { %s1053_s23 = smov (%p37_p0, %s35_s23), 0  ;;  %p58_p5 = scmp.eq.s32.totalorder %s503_s21, 0 }
   0xd   : > { %p838_p4 = por %p52_p2, %p51_p1  ;;  %s39_s26 = ssub.s32 %s757_s19, %s1053_s23 }
   0xe   : > { %p155_p6 = scmp.eq.s32.totalorder %s503_s21, 1  ;;  %p42_p7 = scmp.eq.s32.totalorder %s39_s26, 0 }
   0xf   : > { %p844_p8 = por %p58_p5, %p57_p3  ;;  %p161_p10 = scmp.eq.s32.totalorder %s504_s22, 1 }
  0x10   : > { %p848_p9 = por %p155_p6, %p51_p1  ;;  %p557_p13 = scmp.lt.s32.totalorder %s761_s20, 2 }
  0x11   : > { %s1035_s27 = scalar_select %p844_p8, 1, 0 }
  0x12   : > { %s1036_s28 = scalar_select %p848_p9, 1, 0 }
  0x13   : > { %s853_s29 = scalar_select %p42_p7, %s749_s17, %s44_s24  }
  0x14   : > { %p855_p11 = por %p161_p10, %p57_p3  ;;  %s862_s5 = sand.u32 1, %s749_s17  }
  0x15   : > { %s507_s6 = sshll.u32 %s862_s5, 3  ;;  %s522_s7 = sshll.u32 %s757_s19, 8 }
  0x16   : > { %s1037_s30 = scalar_select %p855_p11, 1, 0 }
  0x17   : > { %s871_s10 = scalar_lea.hbm %s1027_s0, %s522_s7  ;;  %s191_s11 = scalar_lea.vmem [#allocation3], %s507_s6 }
  0x18   : > { %s200_s12 = sshll.u32 %s191_s11, 4  ;;  %p879_p0 = pnand %p557_p13, %p838_p4  ;;  %s875_s12 = int_to_ptr.vmem [resolvable:$true] %s200_s12 }
  0x19   : > { %s188_s14 = scalar_lea.sflag [#allocation4], %s862_s5  ;;  %s614_s21 = scalar_lea.hbm %s871_s10, 128 }
  0x1a   : > { %p615_p3 = scmp.ne.s32.totalorder %s871_s10, %s614_s21  ;;  %p616_p5 = pneg %p879_p0 }
  0x1b   : > { %s619_s25 = scalar_lea.hbm %s1027_s0, 512  ;;  %p620_p4 = scmp.lt.u32.totalorder %s871_s10, %s1027_s0 }
  0x1c   : > { %p617_p6 = pnand %p616_p5, %p615_p3  ;;  %p621_p10 = scmp.lt.u32.totalorder %s619_s25, %s614_s21 }
  0x1d   : > { %p623_p12 = scmp.lt.u32.totalorder %s614_s21, %s871_s10 }
  0x1e   : > { %p618_p7 = pneg %p617_p6  ;;  %p622_p13 = por %p621_p10, %p620_p4 }
  0x20   : > { %p624_p1 = por %p623_p12, %p622_p13 }
  0x22   : > { %p625_p2 = pnand %p624_p1, %p618_p7 }
  0x24   : > { %628 = shalt.err (!%p625_p2)
}
  0x25   : > { %s629_s9 = scalar_lea.vmem %s875_s12, 128  ;;  %s763_s11 = smov [#allocation3]  }
  0x26   : > { %p630_p3 = scmp.ne.s32.totalorder %s875_s12, %s629_s9  ;;  %s634_s22 = sshll.u32 %s763_s11, 4  ;;  %s635_s22 = int_to_ptr.vmem [resolvable:$false] %s634_s22 }
  0x27   : > { %s636_s24 = scalar_lea.vmem %s635_s22, 256  ;;  %p637_p9 = scmp.lt.s32.totalorder %s875_s12, %s635_s22 }
  0x28   : > { %p632_p6 = pnand %p630_p3, %p616_p5  ;;  %p638_p4 = scmp.lt.s32.totalorder %s636_s24, %s629_s9 }
  0x2a   : > { %p633_p11 = pneg %p632_p6  ;;  %p639_p10 = por %p638_p4, %p637_p9 }
  0x2c   : > { %p640_p12 = pnand %p639_p10, %p633_p11 }
  0x2e   : > { %643 = shalt.err (!%p640_p12)
}
  0x2f   : > { %549 = dma.hbm_to_vmem [thread:$0]  (!%p879_p0), %s871_s10, 128, %s875_s12, %s188_s14  }
  0x30   : > { %p1039_p1 = scmp.lt.s32.totalorder %s761_s20, 3  ;;  %p1040_p2 = scmp.ge.s32.totalorder %s761_s20, 1 }
  0x31   : > { %s436_s8 = scalar_lea.hbm %s1028_s1, %s522_s7  ;;  %s211_s9 = scalar_lea.vmem [#allocation6], %s507_s6 }
  0x32   : > { %p915_p7 = pnand %p1040_p2, %p1039_p1  ;;  %s221_s11 = sshll.u32 %s211_s9, 4  ;;  %s222_s11 = int_to_ptr.vmem [resolvable:$true] %s221_s11 }
  0x33   : > { %s926_s22 = scalar_lea.hbm %s436_s8, 128  ;;  %s208_s10 = scalar_lea.sflag [#allocation7], %s862_s5 }
  0x34   : > { %s1041_s21 = scalar_select %p915_p7, 1, 0 }
  0x35   : > { %s674_s12 = scalar_lea.hbm %s436_s8, 256  ;;  %s649_s7 = scalar_lea.hbm %s1028_s1, 512 }
  0x36   : > { %p645_p9 = scmp.ne.s32.totalorder %s926_s22, %s674_s12  ;;  %p650_p3 = scmp.lt.u32.totalorder %s926_s22, %s1028_s1 }
  0x37   : > { %p651_p6 = scmp.lt.u32.totalorder %s649_s7, %s674_s12  ;;  %p653_p10 = scmp.lt.u32.totalorder %s674_s12, %s926_s22 }
  0x38   : > { %p647_p11 = pnand %p645_p9, %p616_p5 }
  0x39   : > { %p652_p4 = por %p651_p6, %p650_p3 }
  0x3a   : > { %p648_p13 = pneg %p647_p11 }
  0x3b   : > { %p654_p12 = por %p653_p10, %p652_p4 }
  0x3d   : > { %p655_p1 = pnand %p654_p12, %p648_p13 }
  0x3f   : > { %658 = shalt.err (!%p655_p1)
}
  0x40   : > { %s659_s5 = scalar_lea.vmem %s222_s11, 128  ;;  %s764_s26 = smov [#allocation6]  }
  0x41   : > { %p660_p2 = scmp.ne.s32.totalorder %s222_s11, %s659_s5  ;;  %s664_s8 = sshll.u32 %s764_s26, 4  ;;  %s665_s8 = int_to_ptr.vmem [resolvable:$false] %s664_s8 }
  0x42   : > { %s666_s9 = scalar_lea.vmem %s665_s8, 256  ;;  %p667_p8 = scmp.lt.s32.totalorder %s222_s11, %s665_s8 }
  0x43   : > { %p662_p9 = pnand %p660_p2, %p616_p5  ;;  %p668_p7 = scmp.lt.s32.totalorder %s666_s9, %s659_s5 }
  0x45   : > { %p663_p11 = pneg %p662_p9  ;;  %p669_p3 = por %p668_p7, %p667_p8 }
  0x47   : > { %p670_p6 = pnand %p669_p3, %p663_p11 }
  0x49   : > { %673 = shalt.err (!%p670_p6)
}
  0x4a   : > { %552 = dma.hbm_to_vmem [thread:$0]  (!%p879_p0), %s926_s22, 128, %s222_s11, %s208_s10  }
  0x4b   : > { %p1042_p13 = scmp.ne.s32.totalorder %s1041_s21, 0 }
  0x4c   : > { %s950_s12 = sand.u32 (!%p1042_p13), 1, %s745_s16   ;;  %p1043_p8 = scmp.ne.s32.totalorder (!%p1042_p13), %s1035_s27, 0 }
  0x4d   : > { %230 = sbr.rel (%p1042_p13) target bundleno = 450 (0x1c2), region = 36  ;;  %s953_s14 = sshll.u32 (!%p1042_p13), %s950_s12, 3 }
  0x4e   : > { %s233_s24 = scalar_lea.sflag (!%p1042_p13), [#allocation4], %s950_s12  ;;  %s236_s7 = scalar_lea.vmem (!%p1042_p13), [#allocation3], %s953_s14 }
  0x54   : > { %728 = dma.done.wait (%p1043_p8), %s233_s24, 128  }
  0x55   : > { %730 = vsyncadd (%p1043_p8), %s233_s24, 4294967168  ;;  %s242_s13 = scalar_lea.sflag [#allocation7], %s950_s12  ;;  %s245_s21 = scalar_lea.vmem [#allocation6], %s953_s14 }
  0x56   : > { %732 = dma.done.wait (%p1043_p8), %s242_s13, 128  }
  0x57   : > { %734 = vsyncadd (%p1043_p8), %s242_s13, 4294967168  ;;  %v765_v0 = vmov 0.0|0.0   ;;  %v276_v1 = vld [vmem:[%s236_s7] sm:$0xff]  ;;  %s766_s11 = smov 127   ;;  %s767_s22 = smov 126   ;;  %v278_v2 = vld [vmem:[%s245_s21] sm:$0xff] }
  0x58   : > { %537 = vmatprep.subr.bf16.mxu0 %v765_v0  ;;  %279 = vrot.lane.b32.xlu0 %v276_v1, %s766_s11  ;;  %vm768_vm0 = vmmov 0   ;;  %v769_v3 = vmov 0.0   ;;  %v300_v4 = vld [vmem:[%s1030_s3] sm:$0xff]  ;;  %v770_v5 = vmov 0   ;;  %vm286_vm1 = vcmask 1048568   ;;  %s519_s5 = sshll.u32 %s753_s18, 7 }
  0x59   : > { %288 = vrot.lane.b32.xlu1 %v276_v1, %s767_s22  ;;  %534 = vmatprep.mubr.msk.f32.mxu0 %vm768_vm0, %v769_v3  ;;  %vm294_vm2 = vcmask 1048560   ;;  %v296_v13 = vld [vmem:[%s1029_s2] sm:$0xff]  ;;  %vm306_vm3 = vcmask 195584   ;;  %s274_s26 = scalar_lea.vmem [#allocation8], %s953_s14  ;;  %s978_s7 = scalar_lea.hbm %s1031_s4, %s519_s5 }
  0x5a   : > { %613 = vset.pattern.permute.xlu0 %v770_v5  ;;  %s396_s8 = sshll.u32 %s274_s26, 4  ;;  %s382_s13 = scalar_lea.sflag [#allocation5], %s950_s12  ;;  %s980_s8 = int_to_ptr.vmem [resolvable:$true] %s396_s8 }
  0x5b   : > { %s675_s21 = scalar_lea.vmem %s980_s8, 128  ;;  %p1044_p5 = scmp.ne.s32.totalorder %s1036_s28, 0 }
  0x5c   : > { %283 = vrot.lane.b32.xlu0 %v278_v2, %s766_s11  ;;  %p676_p0 = scmp.ne.s32.totalorder %s980_s8, %s675_s21  ;;  %s771_s18 = smov [#allocation8]  }
  0x5d   : > { %291 = vrot.lane.b32.xlu1 %v278_v2, %s767_s22  ;;  %s679_s14 = sshll.u32 %s771_s18, 4  ;;  %s680_s14 = int_to_ptr.vmem [resolvable:$false] %s679_s14 }
  0x5e   : > { %p677_p7 = pnand %p676_p0, %p1044_p5  ;;  %s681_s11 = scalar_lea.vmem %s680_s14, 256 }
  0x5f   : > { %p682_p10 = scmp.lt.s32.totalorder %s980_s8, %s680_s14  ;;  %p683_p12 = scmp.lt.s32.totalorder %s681_s11, %s675_s21 }
  0x60   : > { %303 = vperm.xlu0 %613, %v300_v4   ;;  %p678_p4 = pneg %p677_p7 }
  0x61   : > { %p684_p1 = por %p683_p12, %p682_p10 }
  0x63   : > { %p685_p2 = pnand %p684_p1, %p678_p4 }
  0xca   : > { %v280_v6 = vpop.permute.xlu0 %279 }
  0xcb   : > { %v289_v7 = vpop.permute.xlu1 %288  ;;  %281 = vst [vmem:[#allocation2 + $0x8] sm:$0xff] %v280_v6 }
  0xcc   : > { %290 = vst [vmem:[#allocation2 + $0x10] sm:$0xff] %v289_v7 }
  0xce   : > { %v284_v8 = vpop.permute.xlu0 %283 }
  0xcf   : > { %v292_v9 = vpop.permute.xlu1 %291  ;;  %287 = vst.msk [vmem:[#allocation2 + $0x8] sm:$0xff] %vm286_vm1, %v284_v8 }
  0xd0   : > { %295 = vst.msk [vmem:[#allocation2 + $0x10] sm:$0xff] %vm294_vm2, %v292_v9 }
  0xd6   : > { %v298_v10 = vld [vmem:[#allocation2 + $0x8] sm:$0xff] }
  0xd7   : > { %v538_v11 = vpack.c.bf16 %v298_v10, %v276_v1  ;;  %v299_v12 = vld [vmem:[#allocation2 + $0x10] sm:$0xff] }
  0xd9   : > { %539 = vmatpush3.bf16.msra.mxu0 %v538_v11 }
  0xda   : > { %532 = vmatprep.subr.mxu0 %v769_v3 }
  0xdd   : > { %533 = vmatpush3.msra.mxu0 %v299_v12 }
  0xde   : > { %535 = vmatmul.mubr.msk.f32.vlgmr.msra.gmra.mrb[0].mxu0 %vm306_vm3, %v296_v13 }
  0xdf   : > { %v304_v14 = vpop.permute.xlu0 %303 }
 0x1b1   : > { %v376_v15 = vpop.f32.mrb[0].mxu0 }
 0x1b2   : > { %v377_v16 = vadd.f32 %v376_v15, %v304_v14  ;;  %v536_v17 = vpop.f32.mrb[1].mxu0 }
 0x1b4   : > { %380 = vst [vmem:[%s274_s26] sm:$0xff] %v377_v16 }
 0x1b5   : > { %688 = shalt.err (!%p685_p2)
}
 0x1b6   : > { %s689_s12 = scalar_lea.hbm %s978_s7, 128  ;;  %s693_s25 = scalar_lea.hbm %s1031_s4, 256 }
 0x1b7   : > { %p690_p9 = scmp.ne.s32.totalorder %s978_s7, %s689_s12  ;;  %p694_p6 = scmp.lt.u32.totalorder %s978_s7, %s1031_s4 }
 0x1b8   : > { %p695_p13 = scmp.lt.u32.totalorder %s693_s25, %s689_s12  ;;  %p697_p0 = scmp.lt.u32.totalorder %s689_s12, %s978_s7 }
 0x1b9   : > { %p691_p11 = pnand %p690_p9, %p1044_p5 }
 0x1ba   : > { %p696_p8 = por %p695_p13, %p694_p6 }
 0x1bb   : > { %p692_p3 = pneg %p691_p11 }
 0x1bc   : > { %p698_p7 = por %p697_p0, %p696_p8 }
 0x1be   : > { %p699_p4 = pnand %p698_p7, %p692_p3 }
 0x1c0   : > { %702 = shalt.err (!%p699_p4)
}
 0x1c1   : > { %544 = dma.vmem_to_hbm [thread:$0]  (%p1044_p5), %s980_s8, 128, %s978_s7, %s382_s13  }
 0x1c2 PF: > { %s408_s5 = sand.u32 1, %s741_s15   ;;  %p1045_p10 = scmp.ne.s32.totalorder %s1037_s30, 0 }
 0x1c3   : > { %p1046_p12 = scmp.ge.s32.totalorder %s761_s20, 2  ;;  %s409_s26 = scalar_lea.sflag [#allocation5], %s408_s5 }
 0x1c5   : > { %p554_p1 = pnand %p1046_p12, %p1045_p10 }
 0x1c7   : > { %736 = dma.done.wait (!%p554_p1), %s409_s26, 128  }
 0x1c8   : > { %738 = vsyncadd (!%p554_p1), %s409_s26, 4294967168  ;;  %s23_s20 = sadd.s32 1, %s761_s20   ;;  %s1047_s15 = smov %s745_s16 }
 0x1c9   : > { %p20_p2 = scmp.ge.s32.totalorder %s23_s20, 4   ;;  %s1048_s16 = smov %s749_s17 }
 0x1ca   : > { %s1049_s17 = smov %s853_s29  ;;  %s1050_s18 = smov %s757_s19 }
 0x1cb   : > { %s1051_s19 = smov %s1053_s23  ;;  %22 = sbr.rel (!%p20_p2) target bundleno = 8 (0x8), region = 94 }
 0x1d2   :  { %414 = vsyncpa [#allocation4], 1 }
 0x1d3   :  { %416 = vsyncpa [#allocation4 + $0x1], 1 }
 0x1d4   :  { %417 = vsyncpa [#allocation7], 1 }
 0x1d5   :  { %419 = vsyncpa [#allocation7 + $0x1], 1 }
 0x1d6   :  { %420 = vsyncpa [#allocation5], 1 }
 0x1d7   :  { %422 = vsyncpa [#allocation5 + $0x1], 1 }

</bundles_post_ra>
